<compile_context>
chip_gen: v5e
topology: v5e:2x2
jax: 0.10.0
libtpu: 0.0.40
codegen_flags: <defaults>
</compile_context>

<pallas_src>
import functools

import jax
import jax.numpy as jnp
from jax.experimental import pallas as pl
from jax.experimental.pallas import tpu as pltpu


def _vmem_capacity_bytes():
    """Generation-aware VMEM capacity (v5e/v6e: 128 MiB, v7x: 64 MiB per TC)."""
    try:
        info = pltpu.get_tpu_info()
        for name in ("vmem_capacity_bytes", "vmem_size_bytes", "vmem_bytes"):
            cap = getattr(info, name, None)
            if cap:
                return int(cap)
    except Exception:
        pass
    return 64 << 20  # conservative fallback (v7x per-TC VMEM)


def _pick_tile_b(batch, row_bytes):
    """Rows per grid step.

    * dtype-aware: `row_bytes` is the actual streamed bytes per batch row across
      the 4 inputs (x, rec_x, z, rec_z) in their native dtypes.
    * per-step streamed payload targets ~8 MiB (well past the measured ~85%
      HBM-roofline knee; amortizes the ~0.35us per-grid-step overhead).
    * 2 pipeline buffers per input must fit a generation-aware VMEM budget
      (<= 48 MiB and <= 60% of this chip's VMEM, so v7x's 64 MiB per-TC VMEM
      keeps double-buffering alive while v5e/v6e can use much bigger tiles).
    * multiple of 16 (bf16 packs two rows per sublane).
    * never a single grid step when batch > 16 (v7x megacore needs >= 2 grid
      points on the "parallel" axis, and 1 step means no prefetch overlap).
    """
    if batch <= 16:
        return 8                                      # 2 tiles for 8 < batch <= 16
    vmem_cap = _vmem_capacity_bytes()
    budget = min(48 << 20, int(vmem_cap * 0.6))
    rows_vmem = max(16, budget // max(2 * row_bytes, 1))      # 2 pipeline buffers
    rows_payload = max(16, (8 << 20) // max(row_bytes, 1))    # ~8 MiB streamed/step
    tile_b = min(rows_vmem, rows_payload)
    tile_b = max(16, (tile_b // 16) * 16)                     # sublane-pair multiple
    tile_b = min(tile_b, max(16, ((batch - 1) // 16) * 16))   # guarantee >= 2 steps
    return int(tile_b)


def _pretrain_loss_kernel(x_ref, rec_x_ref, z_ref, rec_z_ref,
                          out_x_ref, out_z_ref, *, true_b, tile_b, need_mask):
    """One batch tile: BCE-with-logits per-column partial sums (no lane reduce)."""
    if need_mask:
        row0 = pl.program_id(0) * tile_b
        rows = row0 + jax.lax.broadcasted_iota(jnp.int32, (tile_b, 1), 0)
        valid = rows < true_b                      # (tile_b, 1), broadcasts over lanes
    else:
        valid = None

    def bce_cols(logits_ref, targets_ref):
        # Cast on load (inputs stream in their native dtype, e.g. bf16),
        # accumulate in f32.
        lg = logits_ref[...].astype(jnp.float32)
        tg = targets_ref[...].astype(jnp.float32)
        # Numerically stable BCE-with-logits, identical to PyTorch:
        #   max(x, 0) - x*y + log(1 + exp(-|x|))
        # TODO(synk): if a v7x bundle dump shows the EUP slot saturating, compute
        # the softplus term in bf16 for bf16 inputs and keep only the sum in f32.
        bce = (jnp.maximum(lg, 0.0) - lg * tg
               + jnp.log1p(jnp.exp(-jnp.abs(lg))))
        if valid is not None:
            bce = jnp.where(valid, bce, 0.0)       # drop padded / OOB tail rows
        # Axis-0 (sublane) reduce only: cross-sublane VPU slab adds, no per-step
        # cross-lane XLU reduce tree or scalar broadcast epilogue.
        cols = jnp.sum(bce, axis=0, keepdims=True)             # (1, cols)
        # Store a lane-dense (8, cols) block (rows are identical copies; the
        # wrapper reads row 0 of each block).
        return jnp.broadcast_to(cols, (8, bce.shape[-1]))

    out_x_ref[...] = bce_cols(rec_x_ref, x_ref)
    out_z_ref[...] = bce_cols(rec_z_ref, z_ref)


def pretrain_loss_optimized(ori, rec, hs, *, tile_b=None):
    """JAX wrapper mirroring pretrainLossOptimized.forward."""
    x, z = ori[0], ori[1]
    b, d = x.shape
    dz = z.shape[1]
    # torch .squeeze() drops the trailing singleton of (B, D, 1); use an explicit
    # reshape so the B == 1 case keeps its 2-D (B, D) layout (metadata-only op).
    rec_x = rec[0].reshape(b, d)
    rec_z = rec[1].reshape(b, dz)

    # Dtype-aware streamed bytes per batch row across the 4 inputs.
    row_bytes = (d * (jnp.dtype(x.dtype).itemsize + jnp.dtype(rec_x.dtype).itemsize)
                 + dz * (jnp.dtype(z.dtype).itemsize + jnp.dtype(rec_z.dtype).itemsize))

    if tile_b is None:
        tile_b = _pick_tile_b(b, row_bytes)
    assert tile_b >= 8 and tile_b % 8 == 0, "tile_b must be a positive multiple of 8"
    num_tiles = -(-b // tile_b)
    need_mask = (num_tiles * tile_b) != b

    kernel = functools.partial(_pretrain_loss_kernel,
                               true_b=b, tile_b=tile_b, need_mask=need_mask)

    elems = b * (d + dz)
    out_bytes = num_tiles * 8 * (d + dz) * 4
    in_bytes = (x.size * jnp.dtype(x.dtype).itemsize
                + rec_x.size * jnp.dtype(rec_x.dtype).itemsize
                + z.size * jnp.dtype(z.dtype).itemsize
                + rec_z.size * jnp.dtype(rec_z.dtype).itemsize)
    cost = pl.CostEstimate(flops=10 * elems,
                           transcendentals=2 * elems,
                           bytes_accessed=in_bytes + out_bytes)

    # Raise the scoped-VMEM limit above the small v5e/v6e defaults while keeping
    # a safety margin below physical VMEM (esp. v7x's 64 MiB per TC).
    vmem_cap = _vmem_capacity_bytes()
    vmem_limit = int(min(int(vmem_cap * 0.9),
                         max(32 << 20, 2 * tile_b * row_bytes + out_bytes + (8 << 20))))

    part_x, part_z = pl.pallas_call(
        kernel,
        out_shape=(jax.ShapeDtypeStruct((num_tiles * 8, d), jnp.float32),
                   jax.ShapeDtypeStruct((num_tiles * 8, dz), jnp.float32)),
        grid=(num_tiles,),
        in_specs=[
            # NOTE: if a trace ever shows exposed DMA at step boundaries, add
            # pipeline_mode=pl.Buffered(3) to these four specs.
            pl.BlockSpec((tile_b, d), lambda i: (i, 0)),    # x       (targets)
            pl.BlockSpec((tile_b, d), lambda i: (i, 0)),    # rec_x   (logits)
            pl.BlockSpec((tile_b, dz), lambda i: (i, 0)),   # z       (targets)
            pl.BlockSpec((tile_b, dz), lambda i: (i, 0)),   # rec_z   (logits)
        ],
        out_specs=(
            pl.BlockSpec((8, d), lambda i: (i, 0)),         # per-tile column sums (x part)
            pl.BlockSpec((8, dz), lambda i: (i, 0)),        # per-tile column sums (z part)
        ),
        compiler_params=pltpu.CompilerParams(
            dimension_semantics=("parallel",),
            vmem_limit_bytes=vmem_limit),
        cost_estimate=cost,
    )(x, rec_x, z, rec_z)

    # Each tile's per-column partials are replicated across the 8 sublane rows of
    # its output block; take row 0 of every block and finish the tiny reduction
    # in JAX, dividing by the TRUE batch size.
    recon_sum = jnp.sum(part_x[0::8, :]) + jnp.sum(part_z[0::8, :])
    recon_loss = recon_sum / jnp.float32(b)

    # 0 * sum(hs): numerically a no-op but kept (in plain JAX, outside the
    # kernel) so NaN/Inf in hs still propagates like the PyTorch code. Sum is
    # accumulated in f32 so a large bf16 hs doesn't spuriously overflow to inf.
    recon_loss = recon_loss + jnp.float32(0.0) * jnp.sum(hs, dtype=jnp.float32)
    return recon_loss


def _reference(ori, rec, hs):
    """Pure-JAX reference for a correctness check."""
    x = ori[0].astype(jnp.float32)
    z = ori[1].astype(jnp.float32)
    b, d = x.shape
    dz = z.shape[1]
    rec_x = rec[0].reshape(b, d).astype(jnp.float32)
    rec_z = rec[1].reshape(b, dz).astype(jnp.float32)

    def bce(logits, targets):
        return (jnp.maximum(logits, 0.0) - logits * targets
                + jnp.log1p(jnp.exp(-jnp.abs(logits))))

    l1 = jnp.mean(jnp.sum(bce(rec_x, x), axis=1))
    l2 = jnp.mean(jnp.sum(bce(rec_z, z), axis=1))
    return l1 + l2 + 0.0 * jnp.sum(hs.astype(jnp.float32))


if __name__ == "__main__":
    key = jax.random.PRNGKey(0)
    k1, k2, k3, k4, k5 = jax.random.split(key, 5)

    # B not a multiple of the tiles below -> exercises the masked ragged tail.
    B, D, Dz, H = 20, 128, 256, 64

    x = (jax.random.uniform(k1, (B, D)) > 0.5).astype(jnp.float32)
    z = (jax.random.uniform(k2, (B, Dz)) > 0.5).astype(jnp.float32)
    rec_x = jax.random.normal(k3, (B, D, 1), dtype=jnp.float32)   # exercises .squeeze()
    rec_z = jax.random.normal(k4, (B, Dz, 1), dtype=jnp.float32)
    hs = jax.random.normal(k5, (B, H), dtype=jnp.float32)

    ref = _reference((x, z), (rec_x, rec_z), hs)

    # 1) Explicit small tile (tile_b=8 -> 3 grid steps, masked tail on the last).
    loss_tiled = pretrain_loss_optimized((x, z), (rec_x, rec_z), hs, tile_b=8)
    loss_tiled = jax.block_until_ready(loss_tiled)
    assert jnp.allclose(loss_tiled, ref, rtol=1e-5, atol=1e-4), (loss_tiled, ref)

    # 2) Default heuristic tile (16 rows -> 2 grid steps here, masked tail), with
    #    bf16 logits/hs streamed in native dtype and cast to f32 inside the kernel.
    rec_x_bf = rec_x.astype(jnp.bfloat16)
    rec_z_bf = rec_z.astype(jnp.bfloat16)
    hs_bf = hs.astype(jnp.bfloat16)
    loss_bf = pretrain_loss_optimized((x, z), (rec_x_bf, rec_z_bf), hs_bf)
    loss_bf = jax.block_until_ready(loss_bf)
    ref_bf = _reference((x, z), (rec_x_bf, rec_z_bf), hs_bf)
    assert jnp.allclose(loss_bf, ref_bf, rtol=1e-5, atol=1e-3), (loss_bf, ref_bf)

    print("KERNEL_OK")
</pallas_src>

<mosaic_0001>
module attributes {stable_mosaic.version = 11 : i64} {
  func.func @_pretrain_loss_kernel(%arg0: i32, %arg1: memref<8x128xf32, #tpu.memory_space<vmem>>, %arg2: memref<8x128xf32, #tpu.memory_space<vmem>>, %arg3: memref<8x256xf32, #tpu.memory_space<vmem>>, %arg4: memref<8x256xf32, #tpu.memory_space<vmem>>, %arg5: memref<8x128xf32, #tpu.memory_space<vmem>>, %arg6: memref<8x256xf32, #tpu.memory_space<vmem>>) attributes {dimension_semantics = [#tpu.dimension_semantics<parallel>], iteration_bounds = array<i64: 3>, scalar_prefetch = 0 : i64, scratch_operands = 0 : i64, tpu.core_type = #tpu.core_type<tc>, window_params = [{transform_indices = @transform_0, window_bounds = array<i64: 8, 128>}, {transform_indices = @transform_1, window_bounds = array<i64: 8, 128>}, {transform_indices = @transform_2, window_bounds = array<i64: 8, 256>}, {transform_indices = @transform_3, window_bounds = array<i64: 8, 256>}, {transform_indices = @transform_4, window_bounds = array<i64: 8, 128>}, {transform_indices = @transform_5, window_bounds = array<i64: 8, 256>}]} {
    %c8_i32 = arith.constant 8 : i32
    %0 = arith.muli %arg0, %c8_i32 : i32
    %1 = tpu.iota {dimensions = array<i32: 0>} : vector<8x1xi32>
    %2 = vector.broadcast %0 : i32 to vector<8x1xi32>
    %3 = arith.addi %2, %1 : vector<8x1xi32>
    %c20_i32 = arith.constant 20 : i32
    %4 = vector.broadcast %c20_i32 : i32 to vector<8x1xi32>
    %5 = arith.cmpi slt, %3, %4 : vector<8x1xi32>
    %c0 = arith.constant 0 : index
    %c0_0 = arith.constant 0 : index
    %6 = vector.load %arg2[%c0, %c0_0] : memref<8x128xf32, #tpu.memory_space<vmem>>, vector<8x128xf32>
    %c0_1 = arith.constant 0 : index
    %c0_2 = arith.constant 0 : index
    %7 = vector.load %arg1[%c0_1, %c0_2] : memref<8x128xf32, #tpu.memory_space<vmem>>, vector<8x128xf32>
    %cst = arith.constant 0.000000e+00 : f32
    %8 = vector.broadcast %cst : f32 to vector<8x128xf32>
    %9 = arith.maximumf %6, %8 : vector<8x128xf32>
    %10 = arith.mulf %6, %7 : vector<8x128xf32>
    %11 = arith.subf %9, %10 : vector<8x128xf32>
    %12 = math.absf %6 : vector<8x128xf32>
    %cst_3 = arith.constant 0.000000e+00 : f32
    %13 = vector.broadcast %cst_3 : f32 to vector<8x128xf32>
    %14 = arith.subf %13, %12 : vector<8x128xf32>
    %15 = math.exp %14 : vector<8x128xf32>
    %16 = math.log1p %15 : vector<8x128xf32>
    %17 = arith.addf %11, %16 : vector<8x128xf32>
    %cst_4 = arith.constant 0.000000e+00 : f32
    %18 = vector.shape_cast %5 : vector<8x1xi1> to vector<8x1xi1>
    %19 = vector.broadcast %18 : vector<8x1xi1> to vector<8x128xi1>
    %20 = vector.broadcast %cst_4 : f32 to vector<8x128xf32>
    %21 = arith.select %19, %17, %20 : vector<8x128xi1>, vector<8x128xf32>
    %cst_5 = arith.constant dense<0.000000e+00> : vector<128xf32>
    %22 = vector.multi_reduction <add>, %21, %cst_5 [0] : vector<8x128xf32> to vector<128xf32>
    %23 = vector.shape_cast %22 : vector<128xf32> to vector<1x128xf32>
    %24 = vector.shape_cast %23 : vector<1x128xf32> to vector<1x128xf32>
    %25 = vector.broadcast %24 : vector<1x128xf32> to vector<8x128xf32>
    %c0_6 = arith.constant 0 : index
    %c0_7 = arith.constant 0 : index
    %26 = vector.load %arg5[%c0_6, %c0_7] : memref<8x128xf32, #tpu.memory_space<vmem>>, vector<8x128xf32>
    tpu.vector_store %arg5[%c0_6, %c0_7], %25 {strides = array<i32>} : memref<8x128xf32, #tpu.memory_space<vmem>>, vector<8x128xf32>,
    %c0_8 = arith.constant 0 : index
    %c0_9 = arith.constant 0 : index
    %27 = vector.load %arg4[%c0_8, %c0_9] : memref<8x256xf32, #tpu.memory_space<vmem>>, vector<8x256xf32>
    %c0_10 = arith.constant 0 : index
    %c0_11 = arith.constant 0 : index
    %28 = vector.load %arg3[%c0_10, %c0_11] : memref<8x256xf32, #tpu.memory_space<vmem>>, vector<8x256xf32>
    %cst_12 = arith.constant 0.000000e+00 : f32
    %29 = vector.broadcast %cst_12 : f32 to vector<8x256xf32>
    %30 = arith.maximumf %27, %29 : vector<8x256xf32>
    %31 = arith.mulf %27, %28 : vector<8x256xf32>
    %32 = arith.subf %30, %31 : vector<8x256xf32>
    %33 = math.absf %27 : vector<8x256xf32>
    %cst_13 = arith.constant 0.000000e+00 : f32
    %34 = vector.broadcast %cst_13 : f32 to vector<8x256xf32>
    %35 = arith.subf %34, %33 : vector<8x256xf32>
    %36 = math.exp %35 : vector<8x256xf32>
    %37 = math.log1p %36 : vector<8x256xf32>
    %38 = arith.addf %32, %37 : vector<8x256xf32>
    %cst_14 = arith.constant 0.000000e+00 : f32
    %39 = vector.shape_cast %5 : vector<8x1xi1> to vector<8x1xi1>
    %40 = vector.broadcast %39 : vector<8x1xi1> to vector<8x256xi1>
    %41 = vector.broadcast %cst_14 : f32 to vector<8x256xf32>
    %42 = arith.select %40, %38, %41 : vector<8x256xi1>, vector<8x256xf32>
    %cst_15 = arith.constant dense<0.000000e+00> : vector<256xf32>
    %43 = vector.multi_reduction <add>, %42, %cst_15 [0] : vector<8x256xf32> to vector<256xf32>
    %44 = vector.shape_cast %43 : vector<256xf32> to vector<1x256xf32>
    %45 = vector.shape_cast %44 : vector<1x256xf32> to vector<1x256xf32>
    %46 = vector.broadcast %45 : vector<1x256xf32> to vector<8x256xf32>
    %c0_16 = arith.constant 0 : index
    %c0_17 = arith.constant 0 : index
    %47 = vector.load %arg6[%c0_16, %c0_17] : memref<8x256xf32, #tpu.memory_space<vmem>>, vector<8x256xf32>
    tpu.vector_store %arg6[%c0_16, %c0_17], %46 {strides = array<i32>} : memref<8x256xf32, #tpu.memory_space<vmem>>, vector<8x256xf32>,
    return
  }
  func.func @transform_0(%arg0: i32) -> (i32, i32) {
    %c0_i32 = arith.constant 0 : i32
    %c0_i32_0 = arith.constant 0 : i32
    return %arg0, %c0_i32 : i32, i32
  }
  func.func @transform_1(%arg0: i32) -> (i32, i32) {
    %c0_i32 = arith.constant 0 : i32
    %c0_i32_0 = arith.constant 0 : i32
    return %arg0, %c0_i32 : i32, i32
  }
  func.func @transform_2(%arg0: i32) -> (i32, i32) {
    %c0_i32 = arith.constant 0 : i32
    %c0_i32_0 = arith.constant 0 : i32
    return %arg0, %c0_i32 : i32, i32
  }
  func.func @transform_3(%arg0: i32) -> (i32, i32) {
    %c0_i32 = arith.constant 0 : i32
    %c0_i32_0 = arith.constant 0 : i32
    return %arg0, %c0_i32 : i32, i32
  }
  func.func @transform_4(%arg0: i32) -> (i32, i32) {
    %c0_i32 = arith.constant 0 : i32
    %c0_i32_0 = arith.constant 0 : i32
    return %arg0, %c0_i32 : i32, i32
  }
  func.func @transform_5(%arg0: i32) -> (i32, i32) {
    %c0_i32 = arith.constant 0 : i32
    %c0_i32_0 = arith.constant 0 : i32
    return %arg0, %c0_i32 : i32, i32
  }
}

</mosaic_0001>

<bundles_post_ra>
// kernel: tpu_custom_call.1
= control target key start
LH: loop header
LB: loop body
LE: loop exit
PB: predicated region body
PF: predicated region fallthrough
CT: control target
= control target key end

     0   :  { %s1279_s0 = inlined_call_operand.hbm [shape: f32[20,128], index: 0, kind: input, shape index: {}]   ;;  %s1280_s1 = inlined_call_operand.hbm [shape: f32[20,128], index: 1, kind: input, shape index: {}]   ;;  %s1281_s2 = inlined_call_operand.hbm [shape: f32[20,256], index: 2, kind: input, shape index: {}]   ;;  %s1282_s3 = inlined_call_operand.hbm [shape: f32[20,256], index: 3, kind: input, shape index: {}]   ;;  %s1283_s4 = inlined_call_operand.hbm [shape: f32[24,128], index: 4, kind: output, shape index: {0}]   ;;  %s1284_s5 = inlined_call_operand.hbm [shape: f32[24,256], index: 5, kind: output, shape index: {1}]  }
   0x1   :  { %1288 = sst [smem:[#allocation21_spill]] %s1280_s1 }
   0x2   :  { %11 = vsyncpa [#allocation3], 0 }
   0x3   :  { %13 = vsyncpa [#allocation3 + $0x1], 0 }
   0x4   :  { %14 = vsyncpa [#allocation6], 0 }
   0x5   :  { %16 = vsyncpa [#allocation6 + $0x1], 0 }
   0x6   :  { %17 = vsyncpa [#allocation9], 0 }
   0x7   :  { %19 = vsyncpa [#allocation9 + $0x1], 0 }
   0x8   :  { %20 = vsyncpa [#allocation4], 0 }
   0x9   :  { %22 = vsyncpa [#allocation4 + $0x1], 0 }
   0xa   :  { %23 = vsyncpa [#allocation12], 0 }
   0xb   :  { %25 = vsyncpa [#allocation12 + $0x1], 0  ;;  %s1030_s18 = smov 0   ;;  %s1032_s19 = smov 0  }
   0xc   :  { %s1034_s20 = smov 0   ;;  %s1036_s21 = smov 0  }
   0xd LB: > { %1289 = sst [smem:[#allocation18_spill]] %s994_s20  ;;  %s1051_s22 = sadd.s32 4294967295, %s998_s21   ;;  %s998_s21 = sphi %s1036_s21, %s1299_s21   ;;  %s994_s20 = sphi %s1034_s20, %s1301_s20   ;;  %s990_s19 = sphi %s1032_s19, %s1303_s19   ;;  %s986_s18 = sphi %s1030_s18, %s1302_s18  }
   0xe   : > { %s663_s23 = sadd.s32 4294967294, %s998_s21   ;;  %s1055_s24 = sadd.s32 1, %s998_s21  }
   0xf   : > { %1290 = sst [smem:[#allocation19_spill]] %s1055_s24  ;;  %s38_s25 = sadd.s32 1, %s994_s20 }
  0x10   : > { %s35_s26 = ssub.s32 %s998_s21, %s1055_s24  ;;  %p45_p0 = scmp.ne.s32.totalorder %s994_s20, %s990_s19 }
  0x11   : > { %p36_p1 = scmp.eq.s32.totalorder %s35_s26, 0  ;;  %p46_p2 = scmp.eq.s32.totalorder %s998_s21, 0 }
  0x12   : > { %p51_p3 = scmp.ne.s32.totalorder %s990_s19, %s986_s18  ;;  %p52_p4 = scmp.eq.s32.totalorder %s1051_s22, 0 }
  0x13   : > { %s1067_s27 = scalar_select %p36_p1, %s994_s20, %s38_s25  }
  0x14   : > { %p47_p5 = por %p46_p2, %p45_p0  ;;  %p1069_p6 = por %p52_p4, %p51_p3 }
  0x15   : > { %1291 = sst [smem:[#allocation20_spill]] %s1067_s27  ;;  %p153_p7 = scmp.eq.s32.totalorder %s1051_s22, 2 }
  0x16   : > { %p159_p8 = scmp.eq.s32.totalorder %s663_s23, 2  ;;  %p726_p9 = scmp.lt.s32.totalorder %s998_s21, 3 }
  0x17   : > { %p1075_p10 = por %p153_p7, %p45_p0  ;;  %s1084_s6 = sand.u32 1, %s994_s20  }
  0x18   : > { %p1079_p11 = por %p159_p8, %p51_p3  ;;  %s667_s7 = sshll.u32 %s998_s21, 3 }
  0x19   : > { %s666_s8 = sshll.u32 %s1084_s6, 3  ;;  %p1088_p12 = pnand %p726_p9, %p47_p5 }
  0x1a   : > { %s224_s10 = sand.u32 1, %s998_s21   ;;  %s1296_s1 = sld [smem:[#allocation21_spill]] }
  0x1b   : > { %s228_s14 = scalar_lea.vmem [#allocation5], %s666_s8  ;;  %p676_p13 = scmp.ge.s32.totalorder %s998_s21, 1 }
  0x1c   : > { %s236_s15 = sshll.u32 %s228_s14, 4  ;;  %s1099_s17 = scalar_lea.sflag [#allocation6], %s224_s10  ;;  %s237_s15 = int_to_ptr.vmem [resolvable:$true] %s236_s15 }
  0x1d   : > { %p776_p1 = pneg %p1088_p12 }
  0x20   : > { %s232_s13 = scalar_lea.hbm %s1296_s1, %s667_s7  ;;  %s779_s12 = scalar_lea.hbm %s1296_s1, 24 }
  0x21   : > { %s234_s16 = sshll.u32 %s232_s13, 4  ;;  %s235_s16 = int_to_ptr.hbm [resolvable:$true] %s234_s16 }
  0x22   : > { %s772_s23 = sshra.s32 %s235_s16, 4  ;;  %s773_s23 = int_to_ptr.hbm [resolvable:$true] %s772_s23 }
  0x23   : > { %s774_s25 = scalar_lea.hbm %s773_s23, 8  ;;  %p780_p4 = scmp.lt.s32.totalorder %s773_s23, %s1296_s1 }
  0x24   : > { %p775_p0 = scmp.ne.s32.totalorder %s773_s23, %s774_s25  ;;  %p781_p5 = scmp.lt.s32.totalorder %s779_s12, %s774_s25 }
  0x26   : > { %p777_p2 = pnand %p776_p1, %p775_p0  ;;  %p782_p7 = por %p781_p5, %p780_p4 }
  0x28   : > { %p778_p3 = pneg %p777_p2 }
  0x2a   : > { %p783_p8 = pnand %p782_p7, %p778_p3 }
  0x2c   : > { %786 = shalt.err (!%p783_p8)
}
  0x2d   : > { %712 = dma.hbm_to_vmem [thread:$0]  (!%p1088_p12), %s235_s16, 128, %s237_s15, %s1099_s17  }
  0x2e   : > { %p281_p9 = scmp.lt.s32.totalorder %s998_s21, 4  ;;  %s213_s11 = scalar_lea.hbm %s1279_s0, %s667_s7 }
  0x2f   : > { %s215_s25 = sshll.u32 %s213_s11, 4  ;;  %s209_s12 = scalar_lea.vmem [#allocation2], %s666_s8  ;;  %s216_s25 = int_to_ptr.hbm [resolvable:$true] %s215_s25 }
  0x30   : > { %p1121_p0 = pnand %p676_p13, %p281_p9  ;;  %s217_s13 = sshll.u32 %s209_s12, 4  ;;  %s218_s13 = int_to_ptr.vmem [resolvable:$true] %s217_s13 }
  0x31   : > { %s206_s1 = scalar_lea.sflag [#allocation3], %s1084_s6  ;;  %s802_s27 = sshra.s32 %s216_s25, 4  ;;  %s803_s27 = int_to_ptr.hbm [resolvable:$true] %s802_s27 }
  0x32   : > { %s804_s15 = scalar_lea.hbm %s803_s27, 8  ;;  %s809_s10 = scalar_lea.hbm %s1279_s0, 24 }
  0x33   : > { %p805_p2 = scmp.ne.s32.totalorder %s803_s27, %s804_s15  ;;  %p810_p13 = scmp.lt.s32.totalorder %s803_s27, %s1279_s0 }
  0x34   : > { %p811_p5 = scmp.lt.s32.totalorder %s809_s10, %s804_s15 }
  0x35   : > { %p807_p3 = pnand %p805_p2, %p776_p1 }
  0x36   : > { %p812_p7 = por %p811_p5, %p810_p13 }
  0x37   : > { %p808_p4 = pneg %p807_p3 }
  0x39   : > { %p813_p8 = pnand %p812_p7, %p808_p4 }
  0x3b   : > { %816 = shalt.err (!%p813_p8)
}
  0x3c   : > { %709 = dma.hbm_to_vmem [thread:$0]  (!%p1088_p12), %s216_s25, 128, %s218_s13, %s206_s1  }
  0x3d   : > { %s691_s8 = sshll.u32 %s998_s21, 4  ;;  %s1298_s16 = sshll.u32 %s1084_s6, 4 }
  0x3e   : > { %s252_s7 = scalar_lea.hbm %s1281_s2, %s691_s8  ;;  %s247_s20 = scalar_lea.vmem [#allocation7], %s1298_s16 }
  0x3f   : > { %s256_s24 = sshll.u32 %s247_s20, 4  ;;  %s254_s26 = sshll.u32 %s252_s7, 4  ;;  %s257_s24 = int_to_ptr.vmem [resolvable:$true] %s256_s24  ;;  %s255_s26 = int_to_ptr.hbm [resolvable:$true] %s254_s26 }
  0x40   : > { %s832_s27 = sshra.s32 %s255_s26, 4  ;;  %s839_s13 = scalar_lea.hbm %s1281_s2, 48  ;;  %s833_s27 = int_to_ptr.hbm [resolvable:$true] %s832_s27 }
  0x41   : > { %s834_s15 = scalar_lea.hbm %s833_s27, 16  ;;  %p840_p4 = scmp.lt.s32.totalorder %s833_s27, %s1281_s2 }
  0x42   : > { %p835_p9 = scmp.ne.s32.totalorder %s833_s27, %s834_s15  ;;  %p841_p13 = scmp.lt.s32.totalorder %s839_s13, %s834_s15 }
  0x44   : > { %p837_p2 = pnand %p835_p9, %p776_p1  ;;  %p842_p5 = por %p841_p13, %p840_p4 }
  0x46   : > { %p838_p3 = pneg %p837_p2 }
  0x48   : > { %p843_p7 = pnand %p842_p5, %p838_p3 }
  0x4a   : > { %846 = shalt.err (!%p843_p7)
}
  0x4b   : > { %715 = dma.hbm_to_vmem [thread:$0]  (!%p1088_p12), %s255_s26, 256, %s257_s24, %s1099_s17  }
  0x4c   : > { %s272_s12 = scalar_lea.hbm %s1282_s3, %s691_s8  ;;  %s267_s1 = scalar_lea.vmem [#allocation8], %s1298_s16 }
  0x4d   : > { %s274_s7 = sshll.u32 %s272_s12, 4  ;;  %s276_s25 = sshll.u32 %s267_s1, 4  ;;  %s275_s7 = int_to_ptr.hbm [resolvable:$true] %s274_s7  ;;  %s277_s25 = int_to_ptr.vmem [resolvable:$true] %s276_s25 }
  0x4e   : > { %s264_s27 = scalar_lea.sflag [#allocation9], %s1084_s6  ;;  %s862_s15 = sshra.s32 %s275_s7, 4  ;;  %s863_s15 = int_to_ptr.hbm [resolvable:$true] %s862_s15 }
  0x4f   : > { %s864_s13 = scalar_lea.hbm %s863_s15, 16  ;;  %s869_s26 = scalar_lea.hbm %s1282_s3, 48 }
  0x50   : > { %p865_p8 = scmp.ne.s32.totalorder %s863_s15, %s864_s13  ;;  %p870_p3 = scmp.lt.s32.totalorder %s863_s15, %s1282_s3 }
  0x51   : > { %p871_p4 = scmp.lt.s32.totalorder %s869_s26, %s864_s13 }
  0x52   : > { %p867_p9 = pnand %p865_p8, %p776_p1 }
  0x53   : > { %p872_p13 = por %p871_p4, %p870_p3 }
  0x54   : > { %p868_p2 = pneg %p867_p9 }
  0x56   : > { %p873_p5 = pnand %p872_p13, %p868_p2 }
  0x58   : > { %876 = shalt.err (!%p873_p5)
}
  0x59   : > { %718 = dma.hbm_to_vmem [thread:$0]  (!%p1088_p12), %s275_s7, 256, %s277_s25, %s264_s27  }
  0x5a   : > { %285 = sbr.rel (%p1121_p0) target bundleno = 159 (0x9f), region = 36  ;;  %s1178_s6 = sand.u32 (!%p1121_p0), 1, %s990_s19  }
  0x5b   : > { %s1181_s10 = sshll.u32 (!%p1121_p0), %s1178_s6, 3  ;;  %s288_s20 = scalar_lea.sflag (!%p1121_p0), [#allocation3], %s1178_s6 }
  0x5c   : > { %s291_s11 = scalar_lea.vmem (!%p1121_p0), [#allocation2], %s1181_s10 }
  0x5f   : > { %965 = dma.done.wait (%p1069_p6), %s288_s20, 128  }
  0x60   : > { %967 = vsyncadd (%p1069_p6), %s288_s20, 4294967168  ;;  %s297_s9 = sand.u32 1, %s1051_s22   ;;  %s301_s12 = scalar_lea.vmem [#allocation5], %s1181_s10 }
  0x61   : > { %s298_s23 = scalar_lea.sflag [#allocation6], %s297_s9 }
  0x62   : > { %969 = dma.done.wait (%p1069_p6), %s298_s23, 384  }
  0x63   : > { %971 = vsyncadd (%p1069_p6), %s298_s23, 4294966912  ;;  %s1196_s7 = sshll.u32 %s1178_s6, 4  ;;  %s318_s1 = scalar_lea.sflag [#allocation9], %s1178_s6 }
  0x64   : > { %s311_s16 = scalar_lea.vmem [#allocation7], %s1196_s7  ;;  %s321_s25 = scalar_lea.vmem [#allocation8], %s1196_s7 }
  0x65   : > { %973 = dma.done.wait (%p1069_p6), %s318_s1, 256  }
  0x66   : > { %975 = vsyncadd (%p1069_p6), %s318_s1, 4294967040  ;;  %v375_v0 = vld [vmem:[%s301_s12] sm:$0xff]  ;;  %v404_v1 = vld [vmem:[%s321_s25] sm:$0xff]  ;;  %v370_v12 = vlaneseq  ;;  %s683_s28 = sshll.u32 %s1051_s22, 3  ;;  %s693_s27 = sshll.u32 %s1051_s22, 4 }
  0x67   : > { %v380_v2 = vand.u32 2147483647, %v375_v0  ;;  %v405_v3 = vld [vmem:[%s321_s25 + $0x8] sm:$0xff]  ;;  %v414_v4 = vand.u32 2147483647, %v404_v1  ;;  %v376_v18 = vld [vmem:[%s291_s11] sm:$0xff]  ;;  %v372_v22 = vstv %s683_s28  ;;  %s474_s24 = scalar_lea.hbm %s1283_s4, %s683_s28  ;;  %s489_s20 = scalar_lea.hbm %s1284_s5, %s693_s27 }
  0x68   : > { %v415_v5 = vand.u32 2147483647, %v405_v3  ;;  %v371_v21 = vshrl.u32 %v370_v12, 7  ;;  %v406_v23 = vld [vmem:[%s311_s16] sm:$0xff]  ;;  %v377_v25 = vmax.f32 %v375_v0, 0.0  ;;  %v407_v27 = vld [vmem:[%s311_s16 + $0x8] sm:$0xff]  ;;  %v378_v29 = vmul.f32 %v376_v18, %v375_v0 }
  0x69   : > { %v381_v6 = vsub.f32 0.0, %v380_v2  ;;  %v416_v7 = vsub.f32 0.0, %v414_v4  ;;  %v408_v32 = vmax.f32 %v404_v1, 0.0  ;;  %v410_v33 = vmul.f32 %v406_v23, %v404_v1  ;;  %s361_s17 = scalar_lea.vmem [#allocation10], %s1181_s10  ;;  %s478_s11 = sshll.u32 %s474_s24, 4  ;;  %s479_s11 = int_to_ptr.hbm [resolvable:$true] %s478_s11 }
  0x6a   : > { %v417_v8 = vsub.f32 0.0, %v415_v5  ;;  %v409_v36 = vmax.f32 %v405_v3, 0.0  ;;  %v411_v37 = vmul.f32 %v407_v27, %v405_v3  ;;  %v373_v39 = vadd.s32 %v372_v22, %v371_v21  ;;  %s1221_s26 = sshll.u32 %s361_s17, 4  ;;  %s1227_s22 = scalar_lea.vmem [#allocation11], %s1196_s7  ;;  %s477_s26 = int_to_ptr.vmem [resolvable:$true] %s1221_s26 }
  0x6b   : > { %v382_v9 = vmul.f32 1.442695, %v381_v6  ;;  %v418_v10 = vmul.f32 1.442695, %v416_v7  ;;  %v379_v42 = vsub.f32 %v377_v25, %v378_v29  ;;  %v412_v46 = vsub.f32 %v408_v32, %v410_v33  ;;  %s491_s9 = sshll.u32 %s1227_s22, 4  ;;  %s493_s10 = sshll.u32 %s489_s20, 4  ;;  %s1231_s9 = int_to_ptr.vmem [resolvable:$true] %s491_s9  ;;  %s1233_s10 = int_to_ptr.hbm [resolvable:$true] %s493_s10 }
  0x6c   : > { %v420_v11 = vmul.f32 1.442695, %v417_v8  ;;  %v413_v50 = vsub.f32 %v409_v36, %v411_v37  ;;  %vm374_vm3 = vcmp.lt.s32.totalorder %v373_v39, 20  ;;  %s459_s23 = scalar_lea.sflag [#allocation4], %s1178_s6  ;;  %s906_s12 = sshra.s32 %s479_s11, 4  ;;  %s907_s12 = int_to_ptr.hbm [resolvable:$true] %s906_s12 }
  0x6d   : > { %760 = vpow2.f32 %v382_v9  ;;  %s908_s7 = scalar_lea.hbm %s907_s12, 8  ;;  %s912_s25 = scalar_lea.hbm %s1283_s4, 24 }
  0x6e   : > { %762 = vpow2.f32 %v418_v10  ;;  %p909_p6 = scmp.ne.s32.totalorder %s907_s12, %s908_s7  ;;  %p913_p0 = scmp.lt.s32.totalorder %s907_s12, %s1283_s4 }
  0x6f   : > { %764 = vpow2.f32 %v420_v11  ;;  %p914_p7 = scmp.lt.s32.totalorder %s912_s25, %s908_s7 }
  0x70   : > { %p910_p12 = pnand %p909_p6, %p1075_p10 }
  0x71   : > { %p915_p8 = por %p914_p7, %p913_p0 }
  0x72   : > { %p911_p1 = pneg %p910_p12 }
  0x73   : > { %v761_v13 = vpop.eup %760 }
  0x74   : > { %v763_v14 = vpop.eup %762  ;;  %v384_v15 = vadd.f32 1.0, %v761_v13  ;;  %v387_v16 = vmul.f32 -0.5, %v761_v13  ;;  %v390_v30 = vand.u32 2147483647, %v761_v13  ;;  %p916_p9 = pnand %p915_p8, %p911_p1 }
  0x75   : > { %v765_v17 = vpop.eup %764  ;;  %v422_v19 = vadd.f32 1.0, %v763_v14  ;;  %v425_v20 = vmul.f32 -0.5, %v763_v14  ;;  %v428_v34 = vand.u32 2147483647, %v763_v14 }
  0x76   : > { %766 = vlog2.f32 %v384_v15  ;;  %v431_v24 = vadd.f32 1.0, %v765_v17  ;;  %v388_v26 = vadd.f32 1.0, %v387_v16  ;;  %v434_v28 = vmul.f32 -0.5, %v765_v17 }
  0x77   : > { %768 = vlog2.f32 %v422_v19  ;;  %v426_v31 = vadd.f32 1.0, %v425_v20  ;;  %v437_v38 = vand.u32 2147483647, %v765_v17  ;;  %vm391_vm0 = vcmp.lt.f32.partialorder %v390_v30, 0.0004427343 }
  0x78   : > { %770 = vlog2.f32 %v431_v24  ;;  %v435_v35 = vadd.f32 1.0, %v434_v28  ;;  %v389_v40 = vmul.f32 %v761_v13, %v388_v26  ;;  %vm429_vm1 = vcmp.lt.f32.partialorder %v428_v34, 0.0004427343 }
  0x79   : > { %v427_v43 = vmul.f32 %v763_v14, %v426_v31  ;;  %vm438_vm2 = vcmp.lt.f32.partialorder %v437_v38, 0.0004427343 }
  0x7a   : > { %v436_v47 = vmul.f32 %v765_v17, %v435_v35 }
  0x7c   : > { %v767_v41 = vpop.eup %766 }
  0x7d   : > { %v769_v44 = vpop.eup %768  ;;  %v386_v45 = vmul.f32 0.6931472, %v767_v41 }
  0x7e   : > { %v771_v48 = vpop.eup %770  ;;  %v424_v49 = vmul.f32 0.6931472, %v769_v44 }
  0x7f   : > { %v392_v51 = vsel %vm391_vm0, %v389_v40, %v386_v45  ;;  %v433_v52 = vmul.f32 0.6931472, %v771_v48 }
  0x80   : > { %v393_v53 = vadd.f32 %v392_v51, %v379_v42  ;;  %v430_v54 = vsel %vm429_vm1, %v427_v43, %v424_v49 }
  0x81   : > { %v440_v55 = vadd.f32 %v430_v54, %v412_v46  ;;  %v439_v56 = vsel %vm438_vm2, %v436_v47, %v433_v52 }
  0x82   : > { %v396_v57 = vsel %vm374_vm3, %v393_v53, 0.0  ;;  %v441_v58 = vadd.f32 %v439_v56, %v413_v50 }
  0x83   : > { %v397_v59 = vrot.slane %v396_v57, 4  ;;  %v442_v60 = vsel %vm374_vm3, %v440_v55, 0.0 }
  0x84   : > { %v444_v61 = vrot.slane %v442_v60, 4  ;;  %v443_v62 = vsel %vm374_vm3, %v441_v58, 0.0 }
  0x85   : > { %v398_v63 = vadd.f32 %v397_v59, %v396_v57  ;;  %v450_v0 = vrot.slane %v443_v62, 4 }
  0x86   : > { %v445_v1 = vadd.f32 %v444_v61, %v442_v60 }
  0x87   : > { %v399_v2 = vrot.slane %v398_v63, 2  ;;  %v451_v3 = vadd.f32 %v450_v0, %v443_v62 }
  0x88   : > { %v446_v4 = vrot.slane %v445_v1, 2 }
  0x89   : > { %v400_v5 = vadd.f32 %v399_v2, %v398_v63  ;;  %v452_v6 = vrot.slane %v451_v3, 2 }
  0x8a   : > { %v447_v7 = vadd.f32 %v446_v4, %v445_v1 }
  0x8b   : > { %v401_v8 = vrot.slane %v400_v5, 1  ;;  %v453_v9 = vadd.f32 %v452_v6, %v451_v3 }
  0x8c   : > { %v448_v10 = vrot.slane %v447_v7, 1 }
  0x8d   : > { %v402_v11 = vadd.f32 %v401_v8, %v400_v5  ;;  %v454_v12 = vrot.slane %v453_v9, 1 }
  0x8e   : > { %v449_v13 = vadd.f32 %v448_v10, %v447_v7 }
  0x8f   : > { %403 = vst [vmem:[%s361_s17] sm:$0xff] %v402_v11  ;;  %v455_v14 = vadd.f32 %v454_v12, %v453_v9 }
  0x90   : > { %456 = vst [vmem:[%s1227_s22] sm:$0xff] %v449_v13 }
  0x91   : > { %919 = shalt.err (!%p916_p9)
}
  0x92   : > { %702 = dma.vmem_to_hbm [thread:$0]  (%p1075_p10), %s477_s26, 128, %s479_s11, %s459_s23   ;;  %457 = vst [vmem:[%s1227_s22 + $0x8] sm:$0xff] %v455_v14 }
  0x93   : > { %s464_s15 = scalar_lea.sflag [#allocation12], %s1178_s6  ;;  %s934_s13 = sshra.s32 %s1233_s10, 4  ;;  %s935_s13 = int_to_ptr.hbm [resolvable:$true] %s934_s13 }
  0x94   : > { %s936_s24 = scalar_lea.hbm %s935_s13, 16  ;;  %s940_s14 = scalar_lea.hbm %s1284_s5, 48 }
  0x95   : > { %p937_p2 = scmp.ne.s32.totalorder %s935_s13, %s936_s24  ;;  %p941_p13 = scmp.lt.s32.totalorder %s935_s13, %s1284_s5 }
  0x96   : > { %p942_p5 = scmp.lt.s32.totalorder %s940_s14, %s936_s24 }
  0x97   : > { %p938_p3 = pnand %p937_p2, %p1075_p10 }
  0x98   : > { %p943_p6 = por %p942_p5, %p941_p13 }
  0x99   : > { %p939_p4 = pneg %p938_p3 }
  0x9b   : > { %p944_p12 = pnand %p943_p6, %p939_p4 }
  0x9d   : > { %947 = shalt.err (!%p944_p12)
}
  0x9e   : > { %703 = dma.vmem_to_hbm [thread:$0]  (%p1075_p10), %s1231_s9, 256, %s1233_s10, %s464_s15  }
  0x9f PF: > { %p727_p1 = scmp.ge.s32.totalorder %s998_s21, 2  ;;  %s505_s6 = sand.u32 1, %s986_s18  }
  0xa0   : > { %s506_s26 = scalar_lea.sflag [#allocation4], %s505_s6 }
  0xa1   : > { %p720_p0 = pnand %p727_p1, %p1079_p11 }
  0xa3   : > { %p721_p7 = pneg %p720_p0 }
  0xa5   : > { %977 = dma.done.wait (%p721_p7), %s506_s26, 128  }
  0xa6   : > { %979 = vsyncadd (%p721_p7), %s506_s26, 4294967168  ;;  %s516_s11 = scalar_lea.sflag [#allocation12], %s505_s6 }
  0xa7   : > { %981 = dma.done.wait (%p721_p7), %s516_s11, 256  }
  0xa8   : > { %983 = vsyncadd (%p721_p7), %s516_s11, 4294967040  ;;  %s1299_s21 = sld [smem:[#allocation19_spill]]  ;;  %s1302_s18 = smov %s990_s19 }
  0xa9   : > { %s1300_s29 = sld [smem:[#allocation18_spill]] }
  0xaa   : > { %s1301_s20 = sld [smem:[#allocation20_spill]] }
  0xae   : > { %p28_p10 = scmp.ge.s32.totalorder %s1299_s21, 5  }
  0xaf   : > { %s1303_s19 = smov %s1300_s29 }
  0xb0   :  { %30 = sbr.rel (!%p28_p10) target bundleno = 13 (0xd), region = 135 }
  0xb5   :  { %522 = vsyncpa [#allocation3], 1 }
  0xb6   :  { %524 = vsyncpa [#allocation3 + $0x1], 1 }
  0xb7   :  { %525 = vsyncpa [#allocation6], 1 }
  0xb8   :  { %527 = vsyncpa [#allocation6 + $0x1], 1 }
  0xb9   :  { %528 = vsyncpa [#allocation9], 1 }
  0xba   :  { %530 = vsyncpa [#allocation9 + $0x1], 1 }
  0xbb   :  { %531 = vsyncpa [#allocation4], 1 }
  0xbc   :  { %533 = vsyncpa [#allocation4 + $0x1], 1 }
  0xbd   :  { %534 = vsyncpa [#allocation12], 1 }
  0xbe   :  { %536 = vsyncpa [#allocation12 + $0x1], 1 }

</bundles_post_ra>
